<compile_context>
chip_gen: v6e
topology: v6e:2x2x1
jax: 0.10.0
libtpu: 0.0.40
codegen_flags: <defaults>
</compile_context>

<pallas_src>
import jax
import jax.numpy as jnp
from jax.experimental import pallas as pl
from jax.experimental.pallas import tpu as pltpu

_LANE = 128          # lanes per vreg
_SUBL = 8            # sublanes per vreg
_MAX_TC = 1024       # slab width  (lanes per row)
_MAX_TR = 1024       # slab rows per grid step -> 16 MiB payload / step


def _round_up(x, m):
    return ((x + m - 1) // m) * m


def _meta_kernel(x_ref, w_ref, b_ref, o_ref):
    # x_ref: [3, tr, tc] f32 VMEM (batch slab, lane-dense)
    # w_ref: [3] f32 SMEM ; b_ref: [1] f32 SMEM ; o_ref: [tr, tc] f32 VMEM
    # y = w0*x0 + w1*x1 + w2*x2 + b  -> 3 scalar-broadcast FMAs on the VPU.
    y = (x_ref[0] * w_ref[0]
         + x_ref[1] * w_ref[1]
         + x_ref[2] * w_ref[2]
         + b_ref[0])
    o_ref[...] = jax.nn.sigmoid(y).astype(o_ref.dtype)   # EUP exp + recip


def meta_model_forward_planes(x_planes, w, b, *, core_parallel=False):
    """Core kernel entry point.

    x_planes: [3, R, C] f32, batch already laid out as a dense slab
              (R % 8 == 0, C % 128 == 0; sample i lives at [:, i//C, i%C]).
    Returns:  [R, C] f32 slab of sigmoid(w . x + b).
    Preferred path for large B: an upstream op can produce this layout
    directly and consume the slab output, avoiding any extra HBM pass.
    """
    F, R, C = x_planes.shape
    assert F == 3 and R % _SUBL == 0 and C % _LANE == 0
    assert w.shape == (3,) and b.shape == (1,)

    tr = min(R, _MAX_TR)                       # rows per grid step (mult of 8)
    grid = (pl.cdiv(R, tr),)                   # ragged last tile: edge-masked

    # Double-buffered VMEM footprint for this tile choice (+ headroom).
    step_bytes = (3 * tr * C + tr * C) * 4     # x planes + output per step
    vmem_limit = max(2 * step_bytes + (2 << 20), 16 << 20)   # <=~36 MiB: fits
    # v7x's 64 MiB physical VMEM and raises v5e/v6e's 16/32 MiB scoped default.

    dim_sem = (pltpu.CORE_PARALLEL,) if core_parallel else ("parallel",)

    return pl.pallas_call(
        _meta_kernel,
        out_shape=jax.ShapeDtypeStruct((R, C), x_planes.dtype),
        grid=grid,
        in_specs=[
            pl.BlockSpec((F, tr, C), lambda i: (0, i, 0)),        # x slab tile
            pl.BlockSpec(memory_space=pltpu.MemorySpace.SMEM),    # w (3 scalars)
            pl.BlockSpec(memory_space=pltpu.MemorySpace.SMEM),    # b (1 scalar)
        ],
        out_specs=pl.BlockSpec((tr, C), lambda i: (i, 0)),        # dense out tile
        compiler_params=pltpu.CompilerParams(
            dimension_semantics=dim_sem,
            vmem_limit_bytes=vmem_limit,
        ),
        cost_estimate=pl.CostEstimate(
            flops=6 * R * C,                              # 3 mul + 3 add / elem
            transcendentals=R * C,                        # one exp / sigmoid
            bytes_accessed=(3 * R * C + R * C + w.size + b.size) * 4,
        ),
    )(x_planes, w, b)


def meta_model_forward(x, w, b, *, min_pallas_batch=100_000,
                       force_pallas=False, core_parallel=False):
    """PyTorch-layout wrapper: x [B, 3] f32 -> [B, 1] == sigmoid(x @ w + b)."""
    B, F = x.shape
    assert F == 3 and w.shape == (3,) and b.shape == (1,)

    if B < min_pallas_batch and not force_pallas:
        # Small/moderate batch: a pallas_call (+ layout shuffle) is pure
        # overhead; let XLA fuse the whole thing.
        return jax.nn.sigmoid(x @ w[:, None] + b[None, :])

    # Slab geometry: pad only to the (8, 128) block multiple, not to the tile.
    c = _MAX_TC if B >= _MAX_TC else _round_up(B, _LANE)
    r = pl.cdiv(B, c)
    r_pad = _round_up(r, _SUBL)
    n_pad = r_pad * c

    # TODO(synk): for large-B pipelines, have the upstream op emit the
    # [3, R, C] slab directly (meta_model_forward_planes) — this pad+transpose
    # is a separate XLA pass that re-reads all of the kernel's input bytes.
    x_planes = jnp.pad(x.T, ((0, 0), (0, n_pad - B))).reshape(F, r_pad, c)

    out_slab = meta_model_forward_planes(x_planes, w, b,
                                         core_parallel=core_parallel)
    # Back to the PyTorch layout [B, 1]; padded columns (sigmoid(b)) dropped.
    return out_slab.reshape(-1)[:B][:, None]


if __name__ == "__main__":
    key = jax.random.PRNGKey(0)
    kx, kw, kb, kx2 = jax.random.split(key, 4)

    F, O = 3, 1  # nn.Linear(3, 1)

    # Deterministic init mimicking torch's uniform(-1/sqrt(F), 1/sqrt(F)).
    bound = 1.0 / float(jnp.sqrt(jnp.float32(F)))
    w = jax.random.uniform(kw, (F,), jnp.float32, -bound, bound)
    b = jax.random.uniform(kb, (O,), jnp.float32, -bound, bound)

    # 1) Small batch (typical stacking use), Pallas path forced to exercise
    #    the kernel.
    B = 8
    x = jax.random.normal(kx, (B, F), jnp.float32)
    out = jax.block_until_ready(meta_model_forward(x, w, b, force_pallas=True))
    ref = jax.nn.sigmoid(x @ w[:, None] + b[None, :])
    assert out.shape == (B, O)
    assert jnp.allclose(out, ref, atol=1e-5, rtol=1e-5)

    # 2) Ragged batch (not a multiple of the slab width) to exercise the
    #    padding / reshape / multi-row slab paths.
    B2 = 4097
    x2 = jax.random.normal(kx2, (B2, F), jnp.float32)
    out2 = jax.block_until_ready(meta_model_forward(x2, w, b, force_pallas=True))
    ref2 = jax.nn.sigmoid(x2 @ w[:, None] + b[None, :])
    assert out2.shape == (B2, O)
    assert jnp.allclose(out2, ref2, atol=1e-5, rtol=1e-5)

    # 3) Default dispatch (small B -> fused XLA path) matches too.
    out3 = jax.block_until_ready(meta_model_forward(x, w, b))
    assert jnp.allclose(out3, ref, atol=1e-5, rtol=1e-5)

    print("KERNEL_OK")
</pallas_src>

<mosaic_0001>
module attributes {stable_mosaic.version = 11 : i64} {
  func.func @_meta_kernel(%arg0: i32, %arg1: memref<3x8x128xf32, #tpu.memory_space<vmem>>, %arg2: memref<3xf32, #tpu.memory_space<smem>>, %arg3: memref<1xf32, #tpu.memory_space<smem>>, %arg4: memref<8x128xf32, #tpu.memory_space<vmem>>) attributes {dimension_semantics = [#tpu.dimension_semantics<parallel>], iteration_bounds = array<i64: 1>, scalar_prefetch = 0 : i64, scratch_operands = 0 : i64, tpu.core_type = #tpu.core_type<tc>, window_params = [{transform_indices = @transform_0, window_bounds = array<i64: 3, 8, 128>}, {transform_indices = @transform_1, window_bounds = array<i64: 3>}, {transform_indices = @transform_2, window_bounds = array<i64: 1>}, {transform_indices = @transform_3, window_bounds = array<i64: 8, 128>}]} {
    %c0 = arith.constant 0 : index
    %c0_0 = arith.constant 0 : index
    %c0_1 = arith.constant 0 : index
    %0 = vector.load %arg1[%c0, %c0_0, %c0_1] : memref<3x8x128xf32, #tpu.memory_space<vmem>>, vector<1x8x128xf32>
    %1 = vector.shape_cast %0 : vector<1x8x128xf32> to vector<8x128xf32>
    %c0_2 = arith.constant 0 : index
    %2 = memref.load %arg2[%c0_2] : memref<3xf32, #tpu.memory_space<smem>>
    %3 = vector.broadcast %2 : f32 to vector<8x128xf32>
    %4 = arith.mulf %1, %3 : vector<8x128xf32>
    %c1 = arith.constant 1 : index
    %c0_3 = arith.constant 0 : index
    %c0_4 = arith.constant 0 : index
    %5 = vector.load %arg1[%c1, %c0_3, %c0_4] : memref<3x8x128xf32, #tpu.memory_space<vmem>>, vector<1x8x128xf32>
    %6 = vector.shape_cast %5 : vector<1x8x128xf32> to vector<8x128xf32>
    %c1_5 = arith.constant 1 : index
    %7 = memref.load %arg2[%c1_5] : memref<3xf32, #tpu.memory_space<smem>>
    %8 = vector.broadcast %7 : f32 to vector<8x128xf32>
    %9 = arith.mulf %6, %8 : vector<8x128xf32>
    %10 = arith.addf %4, %9 : vector<8x128xf32>
    %c2 = arith.constant 2 : index
    %c0_6 = arith.constant 0 : index
    %c0_7 = arith.constant 0 : index
    %11 = vector.load %arg1[%c2, %c0_6, %c0_7] : memref<3x8x128xf32, #tpu.memory_space<vmem>>, vector<1x8x128xf32>
    %12 = vector.shape_cast %11 : vector<1x8x128xf32> to vector<8x128xf32>
    %c2_8 = arith.constant 2 : index
    %13 = memref.load %arg2[%c2_8] : memref<3xf32, #tpu.memory_space<smem>>
    %14 = vector.broadcast %13 : f32 to vector<8x128xf32>
    %15 = arith.mulf %12, %14 : vector<8x128xf32>
    %16 = arith.addf %10, %15 : vector<8x128xf32>
    %c0_9 = arith.constant 0 : index
    %17 = memref.load %arg3[%c0_9] : memref<1xf32, #tpu.memory_space<smem>>
    %18 = vector.broadcast %17 : f32 to vector<8x128xf32>
    %19 = arith.addf %16, %18 : vector<8x128xf32>
    %20 = arith.negf %19 : vector<8x128xf32>
    %21 = math.exp %20 : vector<8x128xf32>
    %cst = arith.constant 1.000000e+00 : f32
    %22 = vector.broadcast %cst : f32 to vector<8x128xf32>
    %23 = arith.addf %22, %21 : vector<8x128xf32>
    %24 = arith.divf %22, %23 : vector<8x128xf32>
    %c0_10 = arith.constant 0 : index
    %c0_11 = arith.constant 0 : index
    %25 = vector.load %arg4[%c0_10, %c0_11] : memref<8x128xf32, #tpu.memory_space<vmem>>, vector<8x128xf32>
    tpu.vector_store %arg4[%c0_10, %c0_11], %24 {strides = array<i32>} : memref<8x128xf32, #tpu.memory_space<vmem>>, vector<8x128xf32>,
    return
  }
  func.func @transform_0(%arg0: i32) -> (i32, i32, i32) {
    %c0_i32 = arith.constant 0 : i32
    %c0_i32_0 = arith.constant 0 : i32
    %c0_i32_1 = arith.constant 0 : i32
    return %c0_i32, %arg0, %c0_i32_0 : i32, i32, i32
  }
  func.func @transform_1(%arg0: i32) -> i32 {
    %c0_i32 = arith.constant 0 : i32
    %c0_i32_0 = arith.constant 0 : i32
    return %c0_i32 : i32
  }
  func.func @transform_2(%arg0: i32) -> i32 {
    %c0_i32 = arith.constant 0 : i32
    %c0_i32_0 = arith.constant 0 : i32
    return %c0_i32 : i32
  }
  func.func @transform_3(%arg0: i32) -> (i32, i32) {
    %c0_i32 = arith.constant 0 : i32
    %c0_i32_0 = arith.constant 0 : i32
    return %arg0, %c0_i32 : i32, i32
  }
}

</mosaic_0001>

<bundles_post_ra>
// kernel: tpu_custom_call.1
= control target key start
LH: loop header
LB: loop body
LE: loop exit
PB: predicated region body
PF: predicated region fallthrough
CT: control target
= control target key end

     0   :  { %9 = vsyncpa [#allocation4], 0  ;;  %s192_s0 = inlined_call_operand.hbm [shape: f32[3,8,128], index: 0, kind: input, shape index: {}]   ;;  %s193_s1 = inlined_call_operand.vmem [shape: f32[3], index: 1, kind: input, shape index: {}]   ;;  %s194_s2 = inlined_call_operand.<no memory space> [shape: f32[1], index: 2, kind: input, shape index: {}]   ;;  %s195_s3 = inlined_call_operand.hbm [shape: f32[8,128], index: 3, kind: output, shape index: {}]  }
   0x1   :  { %10 = vsyncpa [#allocation6], 0 }
   0x2   :  { %11 = vsyncpa [#allocation5], 0  ;;  %s155_s12 = smov [#allocation3]   ;;  %s30_s16 = sshll.u32 %s193_s1, 4  ;;  %s31_s16 = int_to_ptr.vmem [resolvable:$true] %s30_s16 }
   0x3   :  { %s17_s13 = sshll.u32 %s155_s12, 4  ;;  %s18_s13 = int_to_ptr.vmem [resolvable:$true] %s17_s13 }
   0x4   :  { %s105_s17 = scalar_lea.vmem %s18_s13, 384  ;;  %p110_p1 = scmp.lt.s32.totalorder %s18_s13, %s18_s13 }
   0x5   :  { %p106_p0 = scmp.ne.s32.totalorder %s18_s13, %s105_s17  ;;  %p111_p2 = scmp.lt.s32.totalorder %s105_s17, %s105_s17 }
   0x7   :  { %p112_p3 = por %p111_p2, %p110_p1 }
   0x9   :  { %p113_p4 = pnand %p112_p3, %p106_p0 }
   0xb   :  { %116 = shalt.err (!%p113_p4)
}
   0xc   :  { %s156_s18 = smov 128   ;;  %s157_s19 = smov 8  }
   0xd   :  { %23 = dma.hbm_to_vmem [thread:$0]  %s192_s0, 384, %s18_s13, [#allocation4], %s156_s18, %s156_s18, %s157_s19  }
   0xe   :  { %s117_s22 = scalar_lea.vmem %s31_s16, 16  ;;  %p122_p6 = scmp.lt.s32.totalorder %s31_s16, %s31_s16 }
   0xf   :  { %p118_p5 = scmp.ne.s32.totalorder %s31_s16, %s117_s22  ;;  %p123_p7 = scmp.lt.s32.totalorder %s117_s22, %s117_s22 }
  0x11   :  { %p124_p8 = por %p123_p7, %p122_p6 }
  0x13   :  { %p125_p9 = pnand %p124_p8, %p118_p5 }
  0x15   :  { %128 = shalt.err (!%p125_p9)
}
  0x16   :  { %s158_s1 = smov [#allocation7]  }
  0x17   :  { %33 = dma.vmem_to_smem %s31_s16, 16, %s158_s1, [#allocation6]  }
  0x18   :  { %149 = dma.done.wait [#allocation4], 384  }
  0x19   :  { %150 = vsyncadd [#allocation4], 4294966912 }
  0x1a   :  { %151 = dma.done.wait [#allocation6], 16  }
  0x1b   :  { %152 = vsyncadd [#allocation6], 4294967280 }
  0x1c   :  { %42 = sfence }
  0x1d   :  { %s44_s23 = sld [smem:[#allocation7]]  ;;  %v43_v0 = vld [vmem:[#allocation3] sm:$0xff]  ;;  %v48_v1 = vld [vmem:[#allocation3 + $0x8] sm:$0xff]  ;;  %v54_v3 = vld [vmem:[#allocation3 + $0x10] sm:$0xff]  ;;  %v60_v10 = vstv %s194_s2  ;;  %s159_s27 = smov [#allocation8]  }
  0x1e   :  { %s85_s24 = sld [smem:[#allocation7 + $0x1]]  ;;  %s75_s28 = sshll.u32 %s159_s27, 4  ;;  %s76_s28 = int_to_ptr.vmem [resolvable:$true] %s75_s28 }
  0x1f   :  { %s86_s25 = sld [smem:[#allocation7 + $0x2]]  ;;  %s129_s29 = scalar_lea.vmem %s76_s28, 128 }
  0x20   :  { %p130_p10 = scmp.ne.s32.totalorder %s76_s28, %s129_s29  ;;  %p134_p11 = scmp.lt.s32.totalorder %s76_s28, %s76_s28 }
  0x21   :  { %p135_p12 = scmp.lt.s32.totalorder %s129_s29, %s129_s29 }
  0x23   :  { %v45_v2 = vstv %s44_s23  ;;  %p136_p13 = por %p135_p12, %p134_p11 }
  0x24   :  { %v46_v4 = vmul.f32 %v45_v2, %v43_v0  ;;  %v50_v5 = vstv %s85_s24 }
  0x25   :  { %v51_v6 = vmul.f32 %v50_v5, %v48_v1  ;;  %v56_v7 = vstv %s86_s25  ;;  %p137_p0 = pnand %p136_p13, %p130_p10 }
  0x26   :  { %v57_v8 = vmul.f32 %v56_v7, %v54_v3 }
  0x27   :  { %v52_v9 = vadd.f32 %v51_v6, %v46_v4 }
  0x29   :  { %v58_v11 = vadd.f32 %v57_v8, %v52_v9 }
  0x2b   :  { %v61_v12 = vadd.f32 %v60_v10, %v58_v11 }
  0x2d   :  { %v87_v13 = vmul.f32 -1.442695, %v61_v12 }
  0x2f   :  { %93 = vpow2.f32 %v87_v13 }
  0x3c   :  { %v94_v14 = vpop.eup %93 }
  0x3d   :  { %v65_v15 = vadd.f32 1.0, %v94_v14 }
  0x3f   :  { %95 = vrcp.f32 %v65_v15 }
  0x4c   :  { %v96_v16 = vpop.eup %95 }
  0x4d   :  { %68 = vst [vmem:[#allocation8] sm:$0xff] %v96_v16 }
  0x4e   :  { %140 = shalt.err (!%p137_p0)
}
  0x4f   :  { %78 = dma.vmem_to_hbm [thread:$0]  %s76_s28, 128, %s195_s3, [#allocation5]  }
  0x50   :  { %153 = dma.done.wait [#allocation5], 128  }
  0x51   :  { %154 = vsyncadd [#allocation5], 4294967168 }
  0x52   :  { %82 = vsyncpa [#allocation4], 1 }
  0x53   :  { %83 = vsyncpa [#allocation5], 1 }
  0x54   :  { %84 = vsyncpa [#allocation6], 1 }

</bundles_post_ra>
